<compile_context>
chip_gen: v7x
topology: tpu7x:2x2x1
jax: 0.10.0
libtpu: 0.0.40
codegen_flags: <defaults>
</compile_context>

<pallas_src>
import functools

import jax
import jax.numpy as jnp
from jax.experimental import pallas as pl
from jax.experimental.pallas import tpu as pltpu


def _round_up(n, m):
    return ((n + m - 1) // m) * m


# --------------------------------------------------------------------------
# Kernel
# --------------------------------------------------------------------------
def rmtpp_kernel(x_ref, w_ih_ref, w_hh_ref, b_gate_ref, w_map_ref, b_map_ref,
                 w_head_ref, b_head_ref, out_ref, *,
                 num_classes, hidden, unroll_seq):
    acc_t = jnp.float32
    S, Bt, Dp = x_ref.shape
    H = hidden

    w_ih = w_ih_ref[...]                       # (Dp, Gp), matmul dtype
    w_hh = w_hh_ref[...]                       # (H,  Gp)
    Gp = w_ih.shape[-1]
    mm_dtype = w_hh.dtype
    gate_b = b_gate_ref[...].astype(acc_t)     # (1, Gp), f32

    # (1) Hoisted input-side matmul: one (S*Bt, Dp) @ (Dp, Gp) MXU op; bias
    # added once.  Time-major layout -> xw[t] is a free leading-axis offset.
    x = x_ref[...]
    xw = (jnp.dot(x.reshape(S * Bt, Dp), w_ih, preferred_element_type=acc_t)
          + gate_b).reshape(S, Bt, Gp)

    h0 = jnp.zeros((Bt, H), acc_t)
    c0 = jnp.zeros((Bt, H), acc_t)

    # Gates packed contiguously as [i | f | o | g] (reordered at prepare
    # time); lanes [4H, Gp) are zero padding and are never read.
    def step(gx, h, c):
        gates = gx + jnp.dot(h.astype(mm_dtype), w_hh,
                             preferred_element_type=acc_t)      # (Bt, Gp)
        sig = jax.nn.sigmoid(gates[:, :3 * H])   # one wide EUP pass (i, f, o)
        i_g = sig[:, 0 * H:1 * H]
        f_g = sig[:, 1 * H:2 * H]
        o_g = sig[:, 2 * H:3 * H]
        g_g = jnp.tanh(gates[:, 3 * H:4 * H])
        c = f_g * c + i_g * g_g
        h = o_g * jnp.tanh(c)
        return h, c

    if unroll_seq:
        # Short/medium static trip count: full unroll so the LLO scheduler can
        # overlap step t's EUP/VPU tail with step t+1's MXU push.
        h, c = h0, c0
        for t in range(S):
            h, c = step(xw[t], h, c)
    else:
        # Long sequences: bounded live ranges, partially unrolled fori_loop.
        unroll = 4 if S % 4 == 0 else (2 if S % 2 == 0 else 1)

        def body(t, carry):
            h, c = carry
            return step(xw[t], h, c)

        h, c = jax.lax.fori_loop(0, S, body, (h0, c0), unroll=unroll)

    # Mapping linear + sigmoid.  Padded map lanes give sigmoid(0)=0.5 but the
    # corresponding rows of w_head are zero, so they never contaminate.
    map_out = jax.nn.sigmoid(
        jnp.dot(h.astype(mm_dtype), w_map_ref[...],
                preferred_element_type=acc_t)
        + b_map_ref[...].astype(acc_t))                        # (Bt, Mp)

    # Fused event + time head: one lane-dense matmul.
    #   columns [0, C) -> event logits, column C -> time output, rest padding.
    head = (jnp.dot(map_out.astype(mm_dtype), w_head_ref[...],
                    preferred_element_type=acc_t)
            + b_head_ref[...].astype(acc_t))                   # (Bt, HEAD)

    col = jax.lax.broadcasted_iota(jnp.int32, head.shape, 1)
    evt_mask = col < num_classes
    masked = jnp.where(evt_mask, head, jnp.float32(-1e30))
    m = jnp.max(masked, axis=1, keepdims=True)
    p = jnp.where(evt_mask, jnp.exp(masked - m), 0.0)
    lse = m + jnp.log(jnp.sum(p, axis=1, keepdims=True))

    # Event columns -> log-probs, time column (and padding) -> raw head value.
    # Single lane-dense (Bt, HEAD) unmasked store; wrapper slices pieces out.
    out_ref[...] = jnp.where(evt_mask, head - lse, head)


# --------------------------------------------------------------------------
# Parameter construction / one-time re-layout
# --------------------------------------------------------------------------
def init_params(key, num_classes, embed_dim, lstm_dim, map_dim):
    ks = jax.random.split(key, 10)
    din = embed_dim + 1
    return {
        "embedding": jax.random.normal(ks[0], (num_classes, embed_dim), jnp.float32),
        # PyTorch LSTM layout: W_ih (4H, Din), W_hh (4H, H), b_ih/b_hh (4H,)
        # with gate order [i | f | g | o].
        "w_ih": 0.1 * jax.random.normal(ks[1], (4 * lstm_dim, din), jnp.float32),
        "w_hh": 0.1 * jax.random.normal(ks[2], (4 * lstm_dim, lstm_dim), jnp.float32),
        "b_ih": 0.1 * jax.random.normal(ks[3], (4 * lstm_dim,), jnp.float32),
        "b_hh": 0.1 * jax.random.normal(ks[4], (4 * lstm_dim,), jnp.float32),
        # Linear layers stored PyTorch-style (out, in); re-laid-out once below.
        "w_map": 0.1 * jax.random.normal(ks[5], (map_dim, lstm_dim), jnp.float32),
        "b_map": 0.1 * jax.random.normal(ks[6], (map_dim,), jnp.float32),
        "w_evt": 0.1 * jax.random.normal(ks[7], (num_classes, map_dim), jnp.float32),
        "b_evt": 0.1 * jax.random.normal(ks[8], (num_classes,), jnp.float32),
        "w_time": 0.1 * jax.random.normal(ks[9], (1, map_dim), jnp.float32),
        "b_time": jnp.array([0.05], jnp.float32),
    }


def prepare_params(params, *, matmul_dtype=jnp.bfloat16):
    """One-time weight re-layout (call once, NOT per forward):
      * transpose to (in, out) so the kernel does y = x @ W + b on the MXU,
      * fuse b_ih + b_hh,
      * reorder gates [i|f|g|o] -> [i|f|o|g] (one contiguous sigmoid span),
      * pack gates contiguously: pad 4H up to Gp = round_up(4H, 128)
        (NO per-gate 128-lane padding),
      * fuse the event and time heads into one (mapDim_pad, 128) weight.
    matmul_dtype=bfloat16 is the recommended default on v6e/v7x (~2x MXU rate,
    half the x DMA bytes); f32 accumulation and f32 elementwise are kept
    inside the kernel.  Pass float32 when bit-tight time regression matters."""
    E = params["embedding"].shape[1]
    H = params["w_hh"].shape[1]
    M = params["w_map"].shape[0]
    C = params["w_evt"].shape[0]
    Din = E + 1
    Dp = _round_up(Din, 128)
    Gp = _round_up(4 * H, 128)
    Mp = _round_up(M, 128)
    HEAD = _round_up(C + 1, 128)

    def reorder_ifog(w):  # last-dim gate order [i|f|g|o] -> [i|f|o|g]
        return jnp.concatenate(
            [w[..., 0:H], w[..., H:2 * H], w[..., 3 * H:4 * H], w[..., 2 * H:3 * H]],
            axis=-1)

    w_ih_t = reorder_ifog(params["w_ih"].T)                       # (Din, 4H)
    w_hh_t = reorder_ifog(params["w_hh"].T)                       # (H,   4H)
    b_gate = reorder_ifog((params["b_ih"] + params["b_hh"])[None, :])  # (1, 4H)

    w_ih_p = jnp.pad(w_ih_t, ((0, Dp - Din), (0, Gp - 4 * H)))
    w_hh_p = jnp.pad(w_hh_t, ((0, 0), (0, Gp - 4 * H)))
    b_gate_p = jnp.pad(b_gate, ((0, 0), (0, Gp - 4 * H)))

    w_map_p = jnp.pad(params["w_map"].T, ((0, 0), (0, Mp - M)))   # (H, Mp)
    b_map_p = jnp.pad(params["b_map"][None, :], ((0, 0), (0, Mp - M)))

    w_head = jnp.concatenate([params["w_evt"].T, params["w_time"].T], axis=1)  # (M, C+1)
    b_head = jnp.concatenate([params["b_evt"], params["b_time"]])[None, :]     # (1, C+1)
    w_head_p = jnp.pad(w_head, ((0, Mp - M), (0, HEAD - (C + 1))))
    b_head_p = jnp.pad(b_head, ((0, 0), (0, HEAD - (C + 1))))

    return {
        "embedding": params["embedding"].astype(jnp.float32),
        "w_ih": w_ih_p.astype(matmul_dtype),
        "w_hh": w_hh_p.astype(matmul_dtype),
        "b_gate": b_gate_p,                                       # biases stay f32
        "w_map": w_map_p.astype(matmul_dtype),
        "b_map": b_map_p,
        "w_head": w_head_p.astype(matmul_dtype),
        "b_head": b_head_p,
        "dims": dict(E=E, H=H, M=M, C=C, Din=Din, Dp=Dp, Gp=Gp, Mp=Mp, HEAD=HEAD),
        "matmul_dtype": matmul_dtype,
    }


# --------------------------------------------------------------------------
# Tile / VMEM budgeting
# --------------------------------------------------------------------------
def _pick_tile_and_vmem(B, S, Dp, Gp, Mp, HEAD, H, mm_bytes,
                        vmem_budget=24 << 20):
    """Largest batch tile (multiple of 8, <=256) whose working set fits the
    budget; keep >=2 grid steps when the batch allows (v7x megacore).  Budget
    of 24 MiB stays inside v7x's 64 MiB physical VMEM and v5e's 128 MiB after
    raising the scoped limit explicitly."""
    weight_bytes = ((Dp * Gp + H * Gp + H * Mp + Mp * HEAD) * mm_bytes
                    + (Gp + Mp + HEAD) * 4)

    def working_set(bt):
        return (bt * S * Gp * 4                 # hoisted xw, f32
                + 2 * bt * S * Dp * mm_bytes    # double-buffered x tile
                + 2 * bt * HEAD * 4             # double-buffered output tile
                + bt * (3 * Gp + 8 * H) * 4     # per-step gates / state temps
                + weight_bytes)

    bt = 256
    while bt > 8 and working_set(bt) > vmem_budget:
        bt -= 8
    if B > 8:
        bt = min(bt, _round_up(-(-B // 2), 8))   # aim for >= 2 grid steps
    else:
        bt = min(bt, _round_up(max(B, 1), 8))
    bt = max(bt, 8)
    vmem_limit = int(min(48 << 20, max(2 * working_set(bt), 16 << 20)))
    return bt, vmem_limit


# --------------------------------------------------------------------------
# Forward wrapper
# --------------------------------------------------------------------------
def rmtpp_forward(inp, prepped, *, interpret=False):
    """inp: (B, S, 2) -- [:, :, 0] time (float), [:, :, 1] event id (int-valued).
    (Event ids round-trip through float32: exact only for class counts < 2^24;
    pass events as a separate int array for larger vocabularies.)"""
    dims = prepped["dims"]
    H, C = dims["H"], dims["C"]
    Din, Dp, Gp, Mp, HEAD = dims["Din"], dims["Dp"], dims["Gp"], dims["Mp"], dims["HEAD"]
    mm_dtype = prepped["matmul_dtype"]
    mm_bytes = jnp.dtype(mm_dtype).itemsize
    B, S, _ = inp.shape

    time_seq = inp[:, :, 0:1].astype(jnp.float32)                 # (B, S, 1)
    event_seq = inp[:, :, 1].astype(jnp.int32)                    # (B, S)

    B_tile, vmem_limit = _pick_tile_and_vmem(B, S, Dp, Gp, Mp, HEAD, H, mm_bytes)
    B_pad = _round_up(B, B_tile)

    # Time-major activations (S, B_pad, Dp): built, padded and cast in one
    # fused concatenate + pad + astype pass (no padded-buffer rewrite).
    # Dropout: identity (eval semantics).
    emb_tm = prepped["embedding"][event_seq.T]                    # (S, B, E)
    x_tm = jnp.concatenate([jnp.transpose(time_seq, (1, 0, 2)), emb_tm], axis=2)
    x_p = jnp.pad(x_tm, ((0, 0), (0, B_pad - B), (0, Dp - Din))).astype(mm_dtype)
    # NOTE: in bf16 mode the time channel is cast to bf16 before the input
    # matmul; keep matmul_dtype=float32 if the time regression needs tight
    # precision, or normalize times first.

    kernel = functools.partial(
        rmtpp_kernel, num_classes=C, hidden=H, unroll_seq=(S <= 64))

    const2 = lambda i: (0, 0)                      # weights: VMEM-resident
    out_slab = pl.pallas_call(
        kernel,
        out_shape=jax.ShapeDtypeStruct((B_pad, HEAD), jnp.float32),
        grid=(B_pad // B_tile,),
        in_specs=[
            pl.BlockSpec((S, B_tile, Dp), lambda i: (0, i, 0)),   # x (time-major)
            pl.BlockSpec((Dp, Gp), const2),                       # w_ih
            pl.BlockSpec((H, Gp), const2),                        # w_hh
            pl.BlockSpec((1, Gp), const2),                        # gate bias
            pl.BlockSpec((H, Mp), const2),                        # w_map
            pl.BlockSpec((1, Mp), const2),                        # b_map
            pl.BlockSpec((Mp, HEAD), const2),                     # fused head W
            pl.BlockSpec((1, HEAD), const2),                      # fused head b
        ],
        out_specs=pl.BlockSpec((B_tile, HEAD), lambda i: (i, 0)),
        compiler_params=pltpu.CompilerParams(
            dimension_semantics=("parallel",),                    # megacore on v7x
            vmem_limit_bytes=vmem_limit),
        interpret=interpret,
    )(x_p, prepped["w_ih"], prepped["w_hh"], prepped["b_gate"],
      prepped["w_map"], prepped["b_map"], prepped["w_head"], prepped["b_head"])

    event_out = out_slab[:B, :C]                   # log-probs
    time_out = out_slab[:B, C:C + 1]               # (B, 1)
    last_time = time_seq[:, -1]                    # (B, 1) -- no kernel work needed
    return time_out, event_out, last_time


# --------------------------------------------------------------------------
# Pure-JAX reference (for correctness check)
# --------------------------------------------------------------------------
def rmtpp_reference(inp, params):
    time_seq = inp[:, :, 0:1].astype(jnp.float32)
    event_seq = inp[:, :, 1].astype(jnp.int32)
    x = jnp.concatenate([time_seq, params["embedding"][event_seq]], axis=2)
    B, S, _ = x.shape
    H = params["w_hh"].shape[1]
    w_ih, w_hh = params["w_ih"].T, params["w_hh"].T
    b = params["b_ih"] + params["b_hh"]
    h = jnp.zeros((B, H), jnp.float32)
    c = jnp.zeros((B, H), jnp.float32)
    for t in range(S):
        g = x[:, t, :] @ w_ih + h @ w_hh + b
        i_g = jax.nn.sigmoid(g[:, 0 * H:1 * H])
        f_g = jax.nn.sigmoid(g[:, 1 * H:2 * H])
        g_g = jnp.tanh(g[:, 2 * H:3 * H])
        o_g = jax.nn.sigmoid(g[:, 3 * H:4 * H])
        c = f_g * c + i_g * g_g
        h = o_g * jnp.tanh(c)
    m = jax.nn.sigmoid(h @ params["w_map"].T + params["b_map"])
    event_out = jax.nn.log_softmax(m @ params["w_evt"].T + params["b_evt"], axis=1)
    time_out = m @ params["w_time"].T + params["b_time"]
    return time_out, event_out, time_seq[:, -1]


if __name__ == "__main__":
    # Small shapes consistent with the module.
    B, S = 2, 8
    num_classes, embed_dim, lstm_dim, map_dim = 4, 8, 32, 16

    key = jax.random.PRNGKey(0)
    k_time, k_evt, k_param = jax.random.split(key, 3)

    time_vals = jax.random.uniform(k_time, (B, S, 1), jnp.float32, 0.0, 2.0)
    event_ids = jax.random.randint(k_evt, (B, S, 1), 0, num_classes).astype(jnp.float32)
    inp = jnp.concatenate([time_vals, event_ids], axis=2)           # (B, S, 2)

    params = init_params(k_param, num_classes, embed_dim, lstm_dim, map_dim)
    # One-time weight re-layout.  f32 operands here for a tight correctness
    # check; use the bf16 default (prepare_params(params)) on v6e/v7x.
    prepped = prepare_params(params, matmul_dtype=jnp.float32)

    time_out, event_out, last_time = rmtpp_forward(inp, prepped)
    jax.block_until_ready((time_out, event_out, last_time))

    assert time_out.shape == (B, 1)
    assert event_out.shape == (B, num_classes)
    assert last_time.shape == (B, 1)

    # Correctness vs. plain-JAX reference (loose tol for MXU accumulation order).
    t_ref, e_ref, l_ref = rmtpp_reference(inp, params)
    assert jnp.allclose(time_out, t_ref, atol=1e-2, rtol=1e-2)
    assert jnp.allclose(event_out, e_ref, atol=1e-2, rtol=1e-2)
    assert jnp.allclose(last_time, l_ref, atol=1e-6)
    assert jnp.allclose(jnp.sum(jnp.exp(event_out), axis=1), 1.0, atol=1e-3)

    print("KERNEL_OK")
</pallas_src>

<mosaic_0001>
module attributes {stable_mosaic.version = 11 : i64} {
  func.func @rmtpp_kernel(%arg0: i32, %arg1: memref<8x8x128xf32, #tpu.memory_space<vmem>>, %arg2: memref<128x128xf32, #tpu.memory_space<vmem>>, %arg3: memref<32x128xf32, #tpu.memory_space<vmem>>, %arg4: memref<1x128xf32, #tpu.memory_space<vmem>>, %arg5: memref<32x128xf32, #tpu.memory_space<vmem>>, %arg6: memref<1x128xf32, #tpu.memory_space<vmem>>, %arg7: memref<128x128xf32, #tpu.memory_space<vmem>>, %arg8: memref<1x128xf32, #tpu.memory_space<vmem>>, %arg9: memref<8x128xf32, #tpu.memory_space<vmem>>) attributes {dimension_semantics = [#tpu.dimension_semantics<parallel>], iteration_bounds = array<i64: 1>, scalar_prefetch = 0 : i64, scratch_operands = 0 : i64, tpu.core_type = #tpu.core_type<tc>, window_params = [{transform_indices = @transform_0, window_bounds = array<i64: 8, 8, 128>}, {pipeline_mode = #tpu.pipeline_mode<synchronous>, transform_indices = @transform_1, window_bounds = array<i64: 128, 128>}, {pipeline_mode = #tpu.pipeline_mode<synchronous>, transform_indices = @transform_2, window_bounds = array<i64: 32, 128>}, {pipeline_mode = #tpu.pipeline_mode<synchronous>, transform_indices = @transform_3, window_bounds = array<i64: 1, 128>}, {pipeline_mode = #tpu.pipeline_mode<synchronous>, transform_indices = @transform_4, window_bounds = array<i64: 32, 128>}, {pipeline_mode = #tpu.pipeline_mode<synchronous>, transform_indices = @transform_5, window_bounds = array<i64: 1, 128>}, {pipeline_mode = #tpu.pipeline_mode<synchronous>, transform_indices = @transform_6, window_bounds = array<i64: 128, 128>}, {pipeline_mode = #tpu.pipeline_mode<synchronous>, transform_indices = @transform_7, window_bounds = array<i64: 1, 128>}, {transform_indices = @transform_8, window_bounds = array<i64: 8, 128>}]} {
    %c0 = arith.constant 0 : index
    %c0_0 = arith.constant 0 : index
    %0 = vector.load %arg2[%c0, %c0_0] : memref<128x128xf32, #tpu.memory_space<vmem>>, vector<128x128xf32>
    %c0_1 = arith.constant 0 : index
    %c0_2 = arith.constant 0 : index
    %1 = vector.load %arg3[%c0_1, %c0_2] : memref<32x128xf32, #tpu.memory_space<vmem>>, vector<32x128xf32>
    %c0_3 = arith.constant 0 : index
    %c0_4 = arith.constant 0 : index
    %2 = vector.load %arg4[%c0_3, %c0_4] : memref<1x128xf32, #tpu.memory_space<vmem>>, vector<1x128xf32>
    %c0_5 = arith.constant 0 : index
    %c0_6 = arith.constant 0 : index
    %c0_7 = arith.constant 0 : index
    %3 = vector.load %arg1[%c0_5, %c0_6, %c0_7] : memref<8x8x128xf32, #tpu.memory_space<vmem>>, vector<8x8x128xf32>
    %4 = vector.shape_cast %3 : vector<8x8x128xf32> to vector<64x128xf32>
    %cst = arith.constant dense<0.000000e+00> : vector<64x128xf32>
    %5 = tpu.matmul %4, %0, %cst {dimension_numbers = #tpu.dot_dimension_numbers<[1], [0], [0], [1], [0, 0, 1, 1], [], []>} : vector<64x128xf32>, vector<128x128xf32>, vector<64x128xf32> -> vector<64x128xf32>
    %6 = vector.broadcast %2 : vector<1x128xf32> to vector<64x128xf32>
    %7 = arith.addf %5, %6 : vector<64x128xf32>
    %8 = vector.shape_cast %7 : vector<64x128xf32> to vector<8x8x128xf32>
    %cst_8 = arith.constant 0.000000e+00 : f32
    %9 = vector.broadcast %cst_8 : f32 to vector<8x32xf32>
    %cst_9 = arith.constant 0.000000e+00 : f32
    %10 = vector.broadcast %cst_9 : f32 to vector<8x32xf32>
    %11 = vector.extract_strided_slice %8 {offsets = [0, 0, 0], sizes = [1, 8, 128], strides = [1, 1, 1]} : vector<8x8x128xf32> to vector<1x8x128xf32>
    %12 = vector.shape_cast %11 : vector<1x8x128xf32> to vector<8x128xf32>
    %cst_10 = arith.constant dense<0.000000e+00> : vector<8x128xf32>
    %13 = tpu.matmul %9, %1, %cst_10 {dimension_numbers = #tpu.dot_dimension_numbers<[1], [0], [0], [1], [0, 0, 1, 1], [], []>} : vector<8x32xf32>, vector<32x128xf32>, vector<8x128xf32> -> vector<8x128xf32>
    %14 = arith.addf %12, %13 : vector<8x128xf32>
    %15 = vector.extract_strided_slice %14 {offsets = [0, 0], sizes = [8, 96], strides = [1, 1]} : vector<8x128xf32> to vector<8x96xf32>
    %16 = arith.negf %15 : vector<8x96xf32>
    %17 = math.exp %16 : vector<8x96xf32>
    %cst_11 = arith.constant 1.000000e+00 : f32
    %18 = vector.broadcast %cst_11 : f32 to vector<8x96xf32>
    %19 = arith.addf %18, %17 : vector<8x96xf32>
    %20 = arith.divf %18, %19 : vector<8x96xf32>
    %21 = vector.extract_strided_slice %20 {offsets = [0, 0], sizes = [8, 32], strides = [1, 1]} : vector<8x96xf32> to vector<8x32xf32>
    %22 = vector.extract_strided_slice %20 {offsets = [0, 32], sizes = [8, 32], strides = [1, 1]} : vector<8x96xf32> to vector<8x32xf32>
    %23 = vector.extract_strided_slice %20 {offsets = [0, 64], sizes = [8, 32], strides = [1, 1]} : vector<8x96xf32> to vector<8x32xf32>
    %24 = vector.extract_strided_slice %14 {offsets = [0, 96], sizes = [8, 32], strides = [1, 1]} : vector<8x128xf32> to vector<8x32xf32>
    %25 = math.tanh %24 : vector<8x32xf32>
    %26 = arith.mulf %22, %10 : vector<8x32xf32>
    %27 = arith.mulf %21, %25 : vector<8x32xf32>
    %28 = arith.addf %26, %27 : vector<8x32xf32>
    %29 = math.tanh %28 : vector<8x32xf32>
    %30 = arith.mulf %23, %29 : vector<8x32xf32>
    %31 = vector.extract_strided_slice %8 {offsets = [1, 0, 0], sizes = [1, 8, 128], strides = [1, 1, 1]} : vector<8x8x128xf32> to vector<1x8x128xf32>
    %32 = vector.shape_cast %31 : vector<1x8x128xf32> to vector<8x128xf32>
    %cst_12 = arith.constant dense<0.000000e+00> : vector<8x128xf32>
    %33 = tpu.matmul %30, %1, %cst_12 {dimension_numbers = #tpu.dot_dimension_numbers<[1], [0], [0], [1], [0, 0, 1, 1], [], []>} : vector<8x32xf32>, vector<32x128xf32>, vector<8x128xf32> -> vector<8x128xf32>
    %34 = arith.addf %32, %33 : vector<8x128xf32>
    %35 = vector.extract_strided_slice %34 {offsets = [0, 0], sizes = [8, 96], strides = [1, 1]} : vector<8x128xf32> to vector<8x96xf32>
    %36 = arith.negf %35 : vector<8x96xf32>
    %37 = math.exp %36 : vector<8x96xf32>
    %cst_13 = arith.constant 1.000000e+00 : f32
    %38 = vector.broadcast %cst_13 : f32 to vector<8x96xf32>
    %39 = arith.addf %38, %37 : vector<8x96xf32>
    %40 = arith.divf %38, %39 : vector<8x96xf32>
    %41 = vector.extract_strided_slice %40 {offsets = [0, 0], sizes = [8, 32], strides = [1, 1]} : vector<8x96xf32> to vector<8x32xf32>
    %42 = vector.extract_strided_slice %40 {offsets = [0, 32], sizes = [8, 32], strides = [1, 1]} : vector<8x96xf32> to vector<8x32xf32>
    %43 = vector.extract_strided_slice %40 {offsets = [0, 64], sizes = [8, 32], strides = [1, 1]} : vector<8x96xf32> to vector<8x32xf32>
    %44 = vector.extract_strided_slice %34 {offsets = [0, 96], sizes = [8, 32], strides = [1, 1]} : vector<8x128xf32> to vector<8x32xf32>
    %45 = math.tanh %44 : vector<8x32xf32>
    %46 = arith.mulf %42, %28 : vector<8x32xf32>
    %47 = arith.mulf %41, %45 : vector<8x32xf32>
    %48 = arith.addf %46, %47 : vector<8x32xf32>
    %49 = math.tanh %48 : vector<8x32xf32>
    %50 = arith.mulf %43, %49 : vector<8x32xf32>
    %51 = vector.extract_strided_slice %8 {offsets = [2, 0, 0], sizes = [1, 8, 128], strides = [1, 1, 1]} : vector<8x8x128xf32> to vector<1x8x128xf32>
    %52 = vector.shape_cast %51 : vector<1x8x128xf32> to vector<8x128xf32>
    %cst_14 = arith.constant dense<0.000000e+00> : vector<8x128xf32>
    %53 = tpu.matmul %50, %1, %cst_14 {dimension_numbers = #tpu.dot_dimension_numbers<[1], [0], [0], [1], [0, 0, 1, 1], [], []>} : vector<8x32xf32>, vector<32x128xf32>, vector<8x128xf32> -> vector<8x128xf32>
    %54 = arith.addf %52, %53 : vector<8x128xf32>
    %55 = vector.extract_strided_slice %54 {offsets = [0, 0], sizes = [8, 96], strides = [1, 1]} : vector<8x128xf32> to vector<8x96xf32>
    %56 = arith.negf %55 : vector<8x96xf32>
    %57 = math.exp %56 : vector<8x96xf32>
    %cst_15 = arith.constant 1.000000e+00 : f32
    %58 = vector.broadcast %cst_15 : f32 to vector<8x96xf32>
    %59 = arith.addf %58, %57 : vector<8x96xf32>
    %60 = arith.divf %58, %59 : vector<8x96xf32>
    %61 = vector.extract_strided_slice %60 {offsets = [0, 0], sizes = [8, 32], strides = [1, 1]} : vector<8x96xf32> to vector<8x32xf32>
    %62 = vector.extract_strided_slice %60 {offsets = [0, 32], sizes = [8, 32], strides = [1, 1]} : vector<8x96xf32> to vector<8x32xf32>
    %63 = vector.extract_strided_slice %60 {offsets = [0, 64], sizes = [8, 32], strides = [1, 1]} : vector<8x96xf32> to vector<8x32xf32>
    %64 = vector.extract_strided_slice %54 {offsets = [0, 96], sizes = [8, 32], strides = [1, 1]} : vector<8x128xf32> to vector<8x32xf32>
    %65 = math.tanh %64 : vector<8x32xf32>
    %66 = arith.mulf %62, %48 : vector<8x32xf32>
    %67 = arith.mulf %61, %65 : vector<8x32xf32>
    %68 = arith.addf %66, %67 : vector<8x32xf32>
    %69 = math.tanh %68 : vector<8x32xf32>
    %70 = arith.mulf %63, %69 : vector<8x32xf32>
    %71 = vector.extract_strided_slice %8 {offsets = [3, 0, 0], sizes = [1, 8, 128], strides = [1, 1, 1]} : vector<8x8x128xf32> to vector<1x8x128xf32>
    %72 = vector.shape_cast %71 : vector<1x8x128xf32> to vector<8x128xf32>
    %cst_16 = arith.constant dense<0.000000e+00> : vector<8x128xf32>
    %73 = tpu.matmul %70, %1, %cst_16 {dimension_numbers = #tpu.dot_dimension_numbers<[1], [0], [0], [1], [0, 0, 1, 1], [], []>} : vector<8x32xf32>, vector<32x128xf32>, vector<8x128xf32> -> vector<8x128xf32>
    %74 = arith.addf %72, %73 : vector<8x128xf32>
    %75 = vector.extract_strided_slice %74 {offsets = [0, 0], sizes = [8, 96], strides = [1, 1]} : vector<8x128xf32> to vector<8x96xf32>
    %76 = arith.negf %75 : vector<8x96xf32>
    %77 = math.exp %76 : vector<8x96xf32>
    %cst_17 = arith.constant 1.000000e+00 : f32
    %78 = vector.broadcast %cst_17 : f32 to vector<8x96xf32>
    %79 = arith.addf %78, %77 : vector<8x96xf32>
    %80 = arith.divf %78, %79 : vector<8x96xf32>
    %81 = vector.extract_strided_slice %80 {offsets = [0, 0], sizes = [8, 32], strides = [1, 1]} : vector<8x96xf32> to vector<8x32xf32>
    %82 = vector.extract_strided_slice %80 {offsets = [0, 32], sizes = [8, 32], strides = [1, 1]} : vector<8x96xf32> to vector<8x32xf32>
    %83 = vector.extract_strided_slice %80 {offsets = [0, 64], sizes = [8, 32], strides = [1, 1]} : vector<8x96xf32> to vector<8x32xf32>
    %84 = vector.extract_strided_slice %74 {offsets = [0, 96], sizes = [8, 32], strides = [1, 1]} : vector<8x128xf32> to vector<8x32xf32>
    %85 = math.tanh %84 : vector<8x32xf32>
    %86 = arith.mulf %82, %68 : vector<8x32xf32>
    %87 = arith.mulf %81, %85 : vector<8x32xf32>
    %88 = arith.addf %86, %87 : vector<8x32xf32>
    %89 = math.tanh %88 : vector<8x32xf32>
    %90 = arith.mulf %83, %89 : vector<8x32xf32>
    %91 = vector.extract_strided_slice %8 {offsets = [4, 0, 0], sizes = [1, 8, 128], strides = [1, 1, 1]} : vector<8x8x128xf32> to vector<1x8x128xf32>
    %92 = vector.shape_cast %91 : vector<1x8x128xf32> to vector<8x128xf32>
    %cst_18 = arith.constant dense<0.000000e+00> : vector<8x128xf32>
    %93 = tpu.matmul %90, %1, %cst_18 {dimension_numbers = #tpu.dot_dimension_numbers<[1], [0], [0], [1], [0, 0, 1, 1], [], []>} : vector<8x32xf32>, vector<32x128xf32>, vector<8x128xf32> -> vector<8x128xf32>
    %94 = arith.addf %92, %93 : vector<8x128xf32>
    %95 = vector.extract_strided_slice %94 {offsets = [0, 0], sizes = [8, 96], strides = [1, 1]} : vector<8x128xf32> to vector<8x96xf32>
    %96 = arith.negf %95 : vector<8x96xf32>
    %97 = math.exp %96 : vector<8x96xf32>
    %cst_19 = arith.constant 1.000000e+00 : f32
    %98 = vector.broadcast %cst_19 : f32 to vector<8x96xf32>
    %99 = arith.addf %98, %97 : vector<8x96xf32>
    %100 = arith.divf %98, %99 : vector<8x96xf32>
    %101 = vector.extract_strided_slice %100 {offsets = [0, 0], sizes = [8, 32], strides = [1, 1]} : vector<8x96xf32> to vector<8x32xf32>
    %102 = vector.extract_strided_slice %100 {offsets = [0, 32], sizes = [8, 32], strides = [1, 1]} : vector<8x96xf32> to vector<8x32xf32>
    %103 = vector.extract_strided_slice %100 {offsets = [0, 64], sizes = [8, 32], strides = [1, 1]} : vector<8x96xf32> to vector<8x32xf32>
    %104 = vector.extract_strided_slice %94 {offsets = [0, 96], sizes = [8, 32], strides = [1, 1]} : vector<8x128xf32> to vector<8x32xf32>
    %105 = math.tanh %104 : vector<8x32xf32>
    %106 = arith.mulf %102, %88 : vector<8x32xf32>
    %107 = arith.mulf %101, %105 : vector<8x32xf32>
    %108 = arith.addf %106, %107 : vector<8x32xf32>
    %109 = math.tanh %108 : vector<8x32xf32>
    %110 = arith.mulf %103, %109 : vector<8x32xf32>
    %111 = vector.extract_strided_slice %8 {offsets = [5, 0, 0], sizes = [1, 8, 128], strides = [1, 1, 1]} : vector<8x8x128xf32> to vector<1x8x128xf32>
    %112 = vector.shape_cast %111 : vector<1x8x128xf32> to vector<8x128xf32>
    %cst_20 = arith.constant dense<0.000000e+00> : vector<8x128xf32>
    %113 = tpu.matmul %110, %1, %cst_20 {dimension_numbers = #tpu.dot_dimension_numbers<[1], [0], [0], [1], [0, 0, 1, 1], [], []>} : vector<8x32xf32>, vector<32x128xf32>, vector<8x128xf32> -> vector<8x128xf32>
    %114 = arith.addf %112, %113 : vector<8x128xf32>
    %115 = vector.extract_strided_slice %114 {offsets = [0, 0], sizes = [8, 96], strides = [1, 1]} : vector<8x128xf32> to vector<8x96xf32>
    %116 = arith.negf %115 : vector<8x96xf32>
    %117 = math.exp %116 : vector<8x96xf32>
    %cst_21 = arith.constant 1.000000e+00 : f32
    %118 = vector.broadcast %cst_21 : f32 to vector<8x96xf32>
    %119 = arith.addf %118, %117 : vector<8x96xf32>
    %120 = arith.divf %118, %119 : vector<8x96xf32>
    %121 = vector.extract_strided_slice %120 {offsets = [0, 0], sizes = [8, 32], strides = [1, 1]} : vector<8x96xf32> to vector<8x32xf32>
    %122 = vector.extract_strided_slice %120 {offsets = [0, 32], sizes = [8, 32], strides = [1, 1]} : vector<8x96xf32> to vector<8x32xf32>
    %123 = vector.extract_strided_slice %120 {offsets = [0, 64], sizes = [8, 32], strides = [1, 1]} : vector<8x96xf32> to vector<8x32xf32>
    %124 = vector.extract_strided_slice %114 {offsets = [0, 96], sizes = [8, 32], strides = [1, 1]} : vector<8x128xf32> to vector<8x32xf32>
    %125 = math.tanh %124 : vector<8x32xf32>
    %126 = arith.mulf %122, %108 : vector<8x32xf32>
    %127 = arith.mulf %121, %125 : vector<8x32xf32>
    %128 = arith.addf %126, %127 : vector<8x32xf32>
    %129 = math.tanh %128 : vector<8x32xf32>
    %130 = arith.mulf %123, %129 : vector<8x32xf32>
    %131 = vector.extract_strided_slice %8 {offsets = [6, 0, 0], sizes = [1, 8, 128], strides = [1, 1, 1]} : vector<8x8x128xf32> to vector<1x8x128xf32>
    %132 = vector.shape_cast %131 : vector<1x8x128xf32> to vector<8x128xf32>
    %cst_22 = arith.constant dense<0.000000e+00> : vector<8x128xf32>
    %133 = tpu.matmul %130, %1, %cst_22 {dimension_numbers = #tpu.dot_dimension_numbers<[1], [0], [0], [1], [0, 0, 1, 1], [], []>} : vector<8x32xf32>, vector<32x128xf32>, vector<8x128xf32> -> vector<8x128xf32>
    %134 = arith.addf %132, %133 : vector<8x128xf32>
    %135 = vector.extract_strided_slice %134 {offsets = [0, 0], sizes = [8, 96], strides = [1, 1]} : vector<8x128xf32> to vector<8x96xf32>
    %136 = arith.negf %135 : vector<8x96xf32>
    %137 = math.exp %136 : vector<8x96xf32>
    %cst_23 = arith.constant 1.000000e+00 : f32
    %138 = vector.broadcast %cst_23 : f32 to vector<8x96xf32>
    %139 = arith.addf %138, %137 : vector<8x96xf32>
    %140 = arith.divf %138, %139 : vector<8x96xf32>
    %141 = vector.extract_strided_slice %140 {offsets = [0, 0], sizes = [8, 32], strides = [1, 1]} : vector<8x96xf32> to vector<8x32xf32>
    %142 = vector.extract_strided_slice %140 {offsets = [0, 32], sizes = [8, 32], strides = [1, 1]} : vector<8x96xf32> to vector<8x32xf32>
    %143 = vector.extract_strided_slice %140 {offsets = [0, 64], sizes = [8, 32], strides = [1, 1]} : vector<8x96xf32> to vector<8x32xf32>
    %144 = vector.extract_strided_slice %134 {offsets = [0, 96], sizes = [8, 32], strides = [1, 1]} : vector<8x128xf32> to vector<8x32xf32>
    %145 = math.tanh %144 : vector<8x32xf32>
    %146 = arith.mulf %142, %128 : vector<8x32xf32>
    %147 = arith.mulf %141, %145 : vector<8x32xf32>
    %148 = arith.addf %146, %147 : vector<8x32xf32>
    %149 = math.tanh %148 : vector<8x32xf32>
    %150 = arith.mulf %143, %149 : vector<8x32xf32>
    %151 = vector.extract_strided_slice %8 {offsets = [7, 0, 0], sizes = [1, 8, 128], strides = [1, 1, 1]} : vector<8x8x128xf32> to vector<1x8x128xf32>
    %152 = vector.shape_cast %151 : vector<1x8x128xf32> to vector<8x128xf32>
    %cst_24 = arith.constant dense<0.000000e+00> : vector<8x128xf32>
    %153 = tpu.matmul %150, %1, %cst_24 {dimension_numbers = #tpu.dot_dimension_numbers<[1], [0], [0], [1], [0, 0, 1, 1], [], []>} : vector<8x32xf32>, vector<32x128xf32>, vector<8x128xf32> -> vector<8x128xf32>
    %154 = arith.addf %152, %153 : vector<8x128xf32>
    %155 = vector.extract_strided_slice %154 {offsets = [0, 0], sizes = [8, 96], strides = [1, 1]} : vector<8x128xf32> to vector<8x96xf32>
    %156 = arith.negf %155 : vector<8x96xf32>
    %157 = math.exp %156 : vector<8x96xf32>
    %cst_25 = arith.constant 1.000000e+00 : f32
    %158 = vector.broadcast %cst_25 : f32 to vector<8x96xf32>
    %159 = arith.addf %158, %157 : vector<8x96xf32>
    %160 = arith.divf %158, %159 : vector<8x96xf32>
    %161 = vector.extract_strided_slice %160 {offsets = [0, 0], sizes = [8, 32], strides = [1, 1]} : vector<8x96xf32> to vector<8x32xf32>
    %162 = vector.extract_strided_slice %160 {offsets = [0, 32], sizes = [8, 32], strides = [1, 1]} : vector<8x96xf32> to vector<8x32xf32>
    %163 = vector.extract_strided_slice %160 {offsets = [0, 64], sizes = [8, 32], strides = [1, 1]} : vector<8x96xf32> to vector<8x32xf32>
    %164 = vector.extract_strided_slice %154 {offsets = [0, 96], sizes = [8, 32], strides = [1, 1]} : vector<8x128xf32> to vector<8x32xf32>
    %165 = math.tanh %164 : vector<8x32xf32>
    %166 = arith.mulf %162, %148 : vector<8x32xf32>
    %167 = arith.mulf %161, %165 : vector<8x32xf32>
    %168 = arith.addf %166, %167 : vector<8x32xf32>
    %169 = math.tanh %168 : vector<8x32xf32>
    %170 = arith.mulf %163, %169 : vector<8x32xf32>
    %c0_26 = arith.constant 0 : index
    %c0_27 = arith.constant 0 : index
    %171 = vector.load %arg5[%c0_26, %c0_27] : memref<32x128xf32, #tpu.memory_space<vmem>>, vector<32x128xf32>
    %cst_28 = arith.constant dense<0.000000e+00> : vector<8x128xf32>
    %172 = tpu.matmul %170, %171, %cst_28 {dimension_numbers = #tpu.dot_dimension_numbers<[1], [0], [0], [1], [0, 0, 1, 1], [], []>} : vector<8x32xf32>, vector<32x128xf32>, vector<8x128xf32> -> vector<8x128xf32>
    %c0_29 = arith.constant 0 : index
    %c0_30 = arith.constant 0 : index
    %173 = vector.load %arg6[%c0_29, %c0_30] : memref<1x128xf32, #tpu.memory_space<vmem>>, vector<1x128xf32>
    %174 = vector.broadcast %173 : vector<1x128xf32> to vector<8x128xf32>
    %175 = arith.addf %172, %174 : vector<8x128xf32>
    %176 = arith.negf %175 : vector<8x128xf32>
    %177 = math.exp %176 : vector<8x128xf32>
    %cst_31 = arith.constant 1.000000e+00 : f32
    %178 = vector.broadcast %cst_31 : f32 to vector<8x128xf32>
    %179 = arith.addf %178, %177 : vector<8x128xf32>
    %180 = arith.divf %178, %179 : vector<8x128xf32>
    %c0_32 = arith.constant 0 : index
    %c0_33 = arith.constant 0 : index
    %181 = vector.load %arg7[%c0_32, %c0_33] : memref<128x128xf32, #tpu.memory_space<vmem>>, vector<128x128xf32>
    %cst_34 = arith.constant dense<0.000000e+00> : vector<8x128xf32>
    %182 = tpu.matmul %180, %181, %cst_34 {dimension_numbers = #tpu.dot_dimension_numbers<[1], [0], [0], [1], [0, 0, 1, 1], [], []>} : vector<8x128xf32>, vector<128x128xf32>, vector<8x128xf32> -> vector<8x128xf32>
    %c0_35 = arith.constant 0 : index
    %c0_36 = arith.constant 0 : index
    %183 = vector.load %arg8[%c0_35, %c0_36] : memref<1x128xf32, #tpu.memory_space<vmem>>, vector<1x128xf32>
    %184 = vector.broadcast %183 : vector<1x128xf32> to vector<8x128xf32>
    %185 = arith.addf %182, %184 : vector<8x128xf32>
    %186 = tpu.iota {dimensions = array<i32: 1>} : vector<8x128xi32>
    %c4_i32 = arith.constant 4 : i32
    %187 = vector.broadcast %c4_i32 : i32 to vector<8x128xi32>
    %188 = arith.cmpi slt, %186, %187 : vector<8x128xi32>
    %cst_37 = arith.constant -1.000000e+30 : f32
    %189 = vector.broadcast %cst_37 : f32 to vector<8x128xf32>
    %190 = arith.select %188, %185, %189 : vector<8x128xi1>, vector<8x128xf32>
    %cst_38 = arith.constant dense<0xFF800000> : vector<8xf32>
    %191 = vector.multi_reduction <maximumf>, %190, %cst_38 [1] : vector<8x128xf32> to vector<8xf32>
    %192 = vector.shape_cast %191 : vector<8xf32> to vector<8x1xf32>
    %193 = vector.broadcast %192 : vector<8x1xf32> to vector<8x128xf32>
    %194 = arith.subf %190, %193 : vector<8x128xf32>
    %195 = math.exp %194 : vector<8x128xf32>
    %cst_39 = arith.constant 0.000000e+00 : f32
    %196 = vector.broadcast %cst_39 : f32 to vector<8x128xf32>
    %197 = arith.select %188, %195, %196 : vector<8x128xi1>, vector<8x128xf32>
    %cst_40 = arith.constant dense<0.000000e+00> : vector<8xf32>
    %198 = vector.multi_reduction <add>, %197, %cst_40 [1] : vector<8x128xf32> to vector<8xf32>
    %199 = vector.shape_cast %198 : vector<8xf32> to vector<8x1xf32>
    %200 = math.log %199 : vector<8x1xf32>
    %201 = arith.addf %192, %200 : vector<8x1xf32>
    %202 = vector.broadcast %201 : vector<8x1xf32> to vector<8x128xf32>
    %203 = arith.subf %185, %202 : vector<8x128xf32>
    %204 = arith.select %188, %203, %185 : vector<8x128xi1>, vector<8x128xf32>
    %c0_41 = arith.constant 0 : index
    %c0_42 = arith.constant 0 : index
    %205 = vector.load %arg9[%c0_41, %c0_42] : memref<8x128xf32, #tpu.memory_space<vmem>>, vector<8x128xf32>
    tpu.vector_store %arg9[%c0_41, %c0_42], %204 {strides = array<i32>} : memref<8x128xf32, #tpu.memory_space<vmem>>, vector<8x128xf32>,
    return
  }
  func.func @transform_0(%arg0: i32) -> (i32, i32, i32) {
    %c0_i32 = arith.constant 0 : i32
    %c0_i32_0 = arith.constant 0 : i32
    %c0_i32_1 = arith.constant 0 : i32
    return %c0_i32, %arg0, %c0_i32_0 : i32, i32, i32
  }
  func.func @transform_1(%arg0: i32) -> (i32, i32) {
    %c0_i32 = arith.constant 0 : i32
    %c0_i32_0 = arith.constant 0 : i32
    %c0_i32_1 = arith.constant 0 : i32
    return %c0_i32, %c0_i32_0 : i32, i32
  }
  func.func @transform_2(%arg0: i32) -> (i32, i32) {
    %c0_i32 = arith.constant 0 : i32
    %c0_i32_0 = arith.constant 0 : i32
    %c0_i32_1 = arith.constant 0 : i32
    return %c0_i32, %c0_i32_0 : i32, i32
  }
  func.func @transform_3(%arg0: i32) -> (i32, i32) {
    %c0_i32 = arith.constant 0 : i32
    %c0_i32_0 = arith.constant 0 : i32
    %c0_i32_1 = arith.constant 0 : i32
    return %c0_i32, %c0_i32_0 : i32, i32
  }
  func.func @transform_4(%arg0: i32) -> (i32, i32) {
    %c0_i32 = arith.constant 0 : i32
    %c0_i32_0 = arith.constant 0 : i32
    %c0_i32_1 = arith.constant 0 : i32
    return %c0_i32, %c0_i32_0 : i32, i32
  }
  func.func @transform_5(%arg0: i32) -> (i32, i32) {
    %c0_i32 = arith.constant 0 : i32
    %c0_i32_0 = arith.constant 0 : i32
    %c0_i32_1 = arith.constant 0 : i32
    return %c0_i32, %c0_i32_0 : i32, i32
  }
  func.func @transform_6(%arg0: i32) -> (i32, i32) {
    %c0_i32 = arith.constant 0 : i32
    %c0_i32_0 = arith.constant 0 : i32
    %c0_i32_1 = arith.constant 0 : i32
    return %c0_i32, %c0_i32_0 : i32, i32
  }
  func.func @transform_7(%arg0: i32) -> (i32, i32) {
    %c0_i32 = arith.constant 0 : i32
    %c0_i32_0 = arith.constant 0 : i32
    %c0_i32_1 = arith.constant 0 : i32
    return %c0_i32, %c0_i32_0 : i32, i32
  }
  func.func @transform_8(%arg0: i32) -> (i32, i32) {
    %c0_i32 = arith.constant 0 : i32
    %c0_i32_0 = arith.constant 0 : i32
    return %arg0, %c0_i32 : i32, i32
  }
}

</mosaic_0001>

<bundles_post_ra>
// kernel: tpu_custom_call.1
= control target key start
LH: loop header
LB: loop body
LE: loop exit
PB: predicated region body
PF: predicated region fallthrough
CT: control target
= control target key end

     0   :  { %13 = vsyncpa [#allocation3], 0  ;;  %s2164_s0 = inlined_call_operand.hbm [shape: f32[8,8,128], index: 0, kind: input, shape index: {}]   ;;  %s2165_s1 = inlined_call_operand.hbm [shape: f32[128,128], index: 1, kind: input, shape index: {}]   ;;  %s2166_s2 = inlined_call_operand.hbm [shape: f32[32,128], index: 2, kind: input, shape index: {}]   ;;  %s2167_s3 = inlined_call_operand.vmem [shape: f32[1,128], index: 3, kind: input, shape index: {}]   ;;  %s2168_s4 = inlined_call_operand.hbm [shape: f32[32,128], index: 4, kind: input, shape index: {}]   ;;  %s2169_s5 = inlined_call_operand.vmem [shape: f32[1,128], index: 5, kind: input, shape index: {}]   ;;  %s2170_s6 = inlined_call_operand.hbm [shape: f32[128,128], index: 6, kind: input, shape index: {}]   ;;  %s2171_s7 = inlined_call_operand.vmem [shape: f32[1,128], index: 7, kind: input, shape index: {}]   ;;  %s2172_s8 = inlined_call_operand.hbm [shape: f32[8,128], index: 8, kind: output, shape index: {}]  }
   0x1   :  { %14 = vsyncpa [#allocation6], 0 }
   0x2   :  { %15 = vsyncpa [#allocation9], 0 }
   0x3   :  { %16 = vsyncpa [#allocation4], 0  ;;  %s1876_s27 = smov [#allocation5]   ;;  %s1877_s29 = smov [#allocation8]  }
   0x4   :  { %s34_s28 = sshll.u32 %s1876_s27, 4  ;;  %s60_s30 = sshll.u32 %s1877_s29, 4  ;;  %s35_s28 = int_to_ptr.vmem [resolvable:$true] %s34_s28  ;;  %s1934_s30 = int_to_ptr.vmem [resolvable:$true] %s60_s30 }
   0x5   :  { %s1736_s11 = scalar_lea.hbm %s2165_s1, 2048 }
   0x6   :  { %p1737_p0 = scmp.ne.s32.totalorder %s2165_s1, %s1736_s11  ;;  %p1740_p1 = scmp.lt.u32.totalorder %s1736_s11, %s2165_s1 }
   0x8   :  { %p1742_p2 = pnand %p1740_p1, %p1737_p0 }
   0xa   :  { %1745 = shalt.err (!%p1742_p2)
}
   0xb   :  { %s1746_s16 = scalar_lea.vmem %s35_s28, 2048  ;;  %p1751_p4 = scmp.lt.s32.totalorder %s35_s28, %s35_s28 }
   0xc   :  { %p1747_p3 = scmp.ne.s32.totalorder %s35_s28, %s1746_s16  ;;  %p1752_p5 = scmp.lt.s32.totalorder %s1746_s16, %s1746_s16 }
   0xe   :  { %p1753_p6 = por %p1752_p5, %p1751_p4 }
  0x10   :  { %p1754_p7 = pnand %p1753_p6, %p1747_p3 }
  0x12   :  { %1757 = shalt.err (!%p1754_p7)
}
  0x13   :  { %s1878_s17 = smov 128   ;;  %s1879_s18 = smov 8  }
  0x14   :  { %40 = dma.hbm_to_vmem [thread:$0]  %s2165_s1, 2048, %s35_s28, [#allocation6], %s1878_s17, %s1878_s17, %s1879_s18  }
  0x15   :  { %s1758_s23 = scalar_lea.hbm %s2168_s4, 512 }
  0x16   :  { %p1759_p8 = scmp.ne.s32.totalorder %s2168_s4, %s1758_s23  ;;  %p1762_p9 = scmp.lt.u32.totalorder %s1758_s23, %s2168_s4 }
  0x18   :  { %p1764_p10 = pnand %p1762_p9, %p1759_p8 }
  0x1a   :  { %1767 = shalt.err (!%p1764_p10)
}
  0x1b   :  { %s1768_s29 = scalar_lea.vmem %s1934_s30, 512  ;;  %p1773_p12 = scmp.lt.s32.totalorder %s1934_s30, %s1934_s30 }
  0x1c   :  { %p1769_p11 = scmp.ne.s32.totalorder %s1934_s30, %s1768_s29  ;;  %p1774_p13 = scmp.lt.s32.totalorder %s1768_s29, %s1768_s29 }
  0x1e   :  { %p1775_p0 = por %p1774_p13, %p1773_p12 }
  0x20   :  { %p1776_p1 = pnand %p1775_p0, %p1769_p11 }
  0x22   :  { %1779 = shalt.err (!%p1776_p1)
}
  0x23   :  { %66 = dma.hbm_to_vmem [thread:$0]  %s2168_s4, 512, %s1934_s30, [#allocation9], %s1878_s17, %s1878_s17, %s1879_s18  }
  0x24   :  { %s1880_s9 = smov [#allocation2]   ;;  %s1881_s11 = smov [#allocation7]  }
  0x25   :  { %s22_s10 = sshll.u32 %s1880_s9, 4  ;;  %s46_s12 = sshll.u32 %s1881_s11, 4  ;;  %s23_s10 = int_to_ptr.vmem [resolvable:$true] %s22_s10  ;;  %s1971_s12 = int_to_ptr.vmem [resolvable:$true] %s46_s12 }
  0x26   :  { %s1780_s15 = scalar_lea.hbm %s2164_s0, 1024 }
  0x27   :  { %p1781_p2 = scmp.ne.s32.totalorder %s2164_s0, %s1780_s15  ;;  %p1784_p3 = scmp.lt.u32.totalorder %s1780_s15, %s2164_s0 }
  0x29   :  { %p1786_p4 = pnand %p1784_p3, %p1781_p2 }
  0x2b   :  { %1789 = shalt.err (!%p1786_p4)
}
  0x2c   :  { %s1790_s4 = scalar_lea.vmem %s23_s10, 1024  ;;  %p1795_p6 = scmp.lt.s32.totalorder %s23_s10, %s23_s10 }
  0x2d   :  { %p1791_p5 = scmp.ne.s32.totalorder %s23_s10, %s1790_s4  ;;  %p1796_p7 = scmp.lt.s32.totalorder %s1790_s4, %s1790_s4 }
  0x2f   :  { %p1797_p8 = por %p1796_p7, %p1795_p6 }
  0x31   :  { %p1798_p9 = pnand %p1797_p8, %p1791_p5 }
  0x33   :  { %1801 = shalt.err (!%p1798_p9)
}
  0x34   :  { %28 = dma.hbm_to_vmem [thread:$0]  %s2164_s0, 1024, %s23_s10, [#allocation3], %s1878_s17, %s1878_s17, %s1879_s18  }
  0x35   :  { %s1802_s25 = scalar_lea.hbm %s2166_s2, 512 }
  0x36   :  { %p1803_p10 = scmp.ne.s32.totalorder %s2166_s2, %s1802_s25  ;;  %p1806_p11 = scmp.lt.u32.totalorder %s1802_s25, %s2166_s2 }
  0x38   :  { %p1808_p12 = pnand %p1806_p11, %p1803_p10 }
  0x3a   :  { %1811 = shalt.err (!%p1808_p12)
}
  0x3b   :  { %s1812_s28 = scalar_lea.vmem %s1971_s12, 512  ;;  %p1817_p0 = scmp.lt.s32.totalorder %s1971_s12, %s1971_s12 }
  0x3c   :  { %p1813_p13 = scmp.ne.s32.totalorder %s1971_s12, %s1812_s28  ;;  %p1818_p1 = scmp.lt.s32.totalorder %s1812_s28, %s1812_s28 }
  0x3e   :  { %p1819_p2 = por %p1818_p1, %p1817_p0 }
  0x40   :  { %p1820_p3 = pnand %p1819_p2, %p1813_p13 }
  0x42   :  { %1823 = shalt.err (!%p1820_p3)
}
  0x43   :  { %52 = dma.hbm_to_vmem [thread:$0]  %s2166_s2, 512, %s1971_s12, [#allocation6], %s1878_s17, %s1878_s17, %s1879_s18  }
  0x44   :  { %s1882_s10 = smov [#allocation10]   ;;  %s1824_s15 = scalar_lea.hbm %s2170_s6, 2048 }
  0x45   :  { %s74_s11 = sshll.u32 %s1882_s10, 4  ;;  %p1825_p4 = scmp.ne.s32.totalorder %s2170_s6, %s1824_s15  ;;  %s75_s11 = int_to_ptr.vmem [resolvable:$true] %s74_s11 }
  0x46   :  { %p1828_p5 = scmp.lt.u32.totalorder %s1824_s15, %s2170_s6 }
  0x48   :  { %p1830_p6 = pnand %p1828_p5, %p1825_p4 }
  0x4a   :  { %1833 = shalt.err (!%p1830_p6)
}
  0x4b   :  { %s1834_s4 = scalar_lea.vmem %s75_s11, 2048  ;;  %p1839_p8 = scmp.lt.s32.totalorder %s75_s11, %s75_s11 }
  0x4c   :  { %p1835_p7 = scmp.ne.s32.totalorder %s75_s11, %s1834_s4  ;;  %p1840_p9 = scmp.lt.s32.totalorder %s1834_s4, %s1834_s4 }
  0x4e   :  { %p1841_p10 = por %p1840_p9, %p1839_p8 }
  0x50   :  { %p1842_p11 = pnand %p1841_p10, %p1835_p7 }
  0x52   :  { %1845 = shalt.err (!%p1842_p11)
}
  0x53   :  { %80 = dma.hbm_to_vmem [thread:$0]  %s2170_s6, 2048, %s75_s11, [#allocation9], %s1878_s17, %s1878_s17, %s1879_s18  }
  0x54   :  { %1868 = dma.done.wait [#allocation3], 1024  }
  0x55   :  { %1869 = vsyncadd [#allocation3], 4294966272 }
  0x56   :  { %1870 = dma.done.wait [#allocation6], 2560  }
  0x57   :  { %1871 = vsyncadd [#allocation6], 4294964736 }
  0x58   :  { %1872 = dma.done.wait [#allocation9], 2560  }
  0x59   :  { %1873 = vsyncadd [#allocation9], 4294964736  ;;  %v1883_v0 = vmov 0.0|0.0   ;;  %vm1884_vm0 = vmmov 0   ;;  %v1885_v1 = vmov 0.0   ;;  %v98_v2 = vld [vmem:[#allocation5] sm:$0xff] }
  0x5a   :  { %1573 = vmatprep.subr.bf16.mxu1 %v1883_v0  ;;  %1415 = vmatprep.mubr.msk.f32.mxu1 %vm1884_vm0, %v1885_v1  ;;  %v99_v3 = vld [vmem:[#allocation5 + $0x8] sm:$0xff]  ;;  %v100_v4 = vld [vmem:[#allocation5 + $0x10] sm:$0xff]  ;;  %v101_v6 = vld [vmem:[#allocation5 + $0x18] sm:$0xff]  ;;  %s1886_s18 = smov 32   ;;  %vm238_vm1 = vcmask 261120  }
  0x5b   :  { %v1541_v5 = vpack.c.bf16 %v99_v3, %v98_v2  ;;  %v1545_v7 = vpack.c.bf16 %v101_v6, %v100_v4  ;;  %v102_v8 = vld [vmem:[#allocation5 + $0x20] sm:$0xff]  ;;  %v103_v9 = vld [vmem:[#allocation5 + $0x28] sm:$0xff]  ;;  %v104_v12 = vld [vmem:[#allocation5 + $0x30] sm:$0xff] }
  0x5c   :  { %v114_v10 = vld [vmem:[#allocation7] sm:$0xff]  ;;  %v1549_v11 = vpack.c.bf16 %v103_v9, %v102_v8  ;;  %v105_v13 = vld [vmem:[#allocation5 + $0x38] sm:$0xff]  ;;  %v115_v14 = vld [vmem:[#allocation7 + $0x8] sm:$0xff] }
  0x5d   :  { %1542 = vmatprep.subr.bf16.mxu0 %v1541_v5  ;;  %v2026_v15 = vpack.c.bf16 %v115_v14, %v114_v10  ;;  %v119_v16 = vld [vmem:[#allocation2] sm:$0xff]  ;;  %v116_v17 = vld [vmem:[#allocation7 + $0x10] sm:$0xff]  ;;  %v117_v18 = vld [vmem:[#allocation7 + $0x18] sm:$0xff]  ;;  %v1553_v20 = vpack.c.bf16 %v105_v13, %v104_v12 }
  0x5e   :  { %1544 = vmatpush3.bf16.msra.mxu0 %v1541_v5  ;;  %1395 = vmatprep.mubr.f32.mxu0 %v119_v16  ;;  %v2029_v19 = vpack.c.bf16 %v117_v18, %v116_v17  ;;  %v106_v21 = vld [vmem:[#allocation5 + $0x40] sm:$0xff]  ;;  %v107_v22 = vld [vmem:[#allocation5 + $0x48] sm:$0xff]  ;;  %v108_v24 = vld [vmem:[#allocation5 + $0x50] sm:$0xff] }
  0x5f   :  { %1546 = vmatprep.subr.bf16.mxu0 %v1545_v7  ;;  %1575 = vmatpush3.bf16.msra.mxu1 %v2026_v15  ;;  %v1557_v23 = vpack.c.bf16 %v107_v22, %v106_v21  ;;  %v109_v25 = vld [vmem:[#allocation5 + $0x58] sm:$0xff]  ;;  %v110_v27 = vld [vmem:[#allocation5 + $0x60] sm:$0xff]  ;;  %v111_v28 = vld [vmem:[#allocation5 + $0x68] sm:$0xff] }
  0x60   :  { %1576 = vmatprep.subr.bf16.mxu1 %v1883_v0  ;;  %v1561_v26 = vpack.c.bf16 %v109_v25, %v108_v24  ;;  %v1565_v29 = vpack.c.bf16 %v111_v28, %v110_v27  ;;  %v112_v30 = vld [vmem:[#allocation5 + $0x70] sm:$0xff]  ;;  %v113_v31 = vld [vmem:[#allocation5 + $0x78] sm:$0xff]  ;;  %v120_v33 = vld [vmem:[#allocation2 + $0x8] sm:$0xff] }
  0x61   :  { %v1569_v32 = vpack.c.bf16 %v113_v31, %v112_v30  ;;  %v2045_v36 = vld [vmem:[%s2167_s3] ss:$0 sm:$0xff]  ;;  %s1887_s3 = smov 64   ;;  %v122_v8 = vld [vmem:[#allocation2 + $0x18] sm:$0xff] }
  0x62   :  { %1548 = vmatpush3.bf16.msra.mxu0 %v1545_v7  ;;  %v121_v7 = vld [vmem:[#allocation2 + $0x10] sm:$0xff] }
  0x63   :  { %1550 = vmatprep.subr.bf16.mxu0 %v1549_v11  ;;  %1578 = vmatpush3.bf16.msra.mxu1 %v2029_v19 }
  0x64   :  { %1579 = vmatprep.subr.bf16.mxu1 %v1883_v0 }
  0x66   :  { %1552 = vmatpush3.bf16.msra.mxu0 %v1549_v11  ;;  %1416 = vmatmul.mubr.f32.vlgmr.msra.gmra.mrb[0].mxu1 %v1885_v1 }
  0x67   :  { %1554 = vmatprep.subr.bf16.mxu0 %v1553_v20  ;;  %1581 = vmatpush3.bf16.msra.mxu1 %v2026_v15 }
  0x68   :  { %1582 = vmatprep.subr.bf16.mxu1 %v1883_v0  ;;  %1426 = vmatprep.mubr.msk.f32.mxu1 %vm1884_vm0, %v1885_v1 }
  0x6a   :  { %1556 = vmatpush3.bf16.msra.mxu0 %v1553_v20 }
  0x6b   :  { %1558 = vmatprep.subr.bf16.mxu0 %v1557_v23  ;;  %1584 = vmatpush3.bf16.msra.mxu1 %v2029_v19 }
  0x6c   :  { %1585 = vmatprep.subr.bf16.mxu1 %v1883_v0 }
  0x6e   :  { %1560 = vmatpush3.bf16.msra.mxu0 %v1557_v23 }
  0x6f   :  { %1562 = vmatprep.subr.bf16.mxu0 %v1561_v26 }
  0x72   :  { %1564 = vmatpush3.bf16.msra.mxu0 %v1561_v26 }
  0x73   :  { %1566 = vmatprep.subr.bf16.mxu0 %v1565_v29 }
  0x76   :  { %1568 = vmatpush3.bf16.msra.mxu0 %v1565_v29 }
  0x77   :  { %1570 = vmatprep.subr.bf16.mxu0 %v1569_v32 }
  0x7a   :  { %1572 = vmatpush3.bf16.msra.mxu0 %v1569_v32 }
  0x7b   :  { %1627 = vmatprep.subr.bf16.mxu0 %v1883_v0 }
  0x7d   :  { %1396 = vmatmul.mubr.f32.vlgmr.msra.gmra.mrb[0].mxu0 %v120_v33 }
  0x7e   :  { %1398 = vmatprep.mubr.f32.mxu0 %v121_v7 }
  0x81   :  { %1399 = vmatmul.mubr.f32.gmra.mrb[2].mxu0 %v122_v8 }
 0x139   :  { %v308_v34 = vpop.f32.mrb[0].mxu1 }
 0x13a   :  { %v1417_v35 = vpop.f32.mrb[1].mxu1 }
 0x150   :  { %v1397_v37 = vpop.f32.mrb[0].mxu0 }
 0x151   :  { %v199_v38 = vpop.f32.mrb[1].mxu0  ;;  %v205_v55 = vadd.f32 %v1397_v37, %v2045_v36 }
 0x152   :  { %v200_v39 = vadd.f32 %v2045_v36, %v199_v38 }
 0x154   :  { %v312_v40 = vadd.f32 %v308_v34, %v200_v39  ;;  %v1400_v12 = vpop.f32.mrb[2].mxu0 }
 0x155   :  { %v209_v13 = vpop.f32.mrb[3].mxu0  ;;  %v215_v35 = vadd.f32 %v1400_v12, %v2045_v36 }
 0x156   :  { %1664 = vtanh.f32 %v312_v40  ;;  %v1258_v42 = vmul.f32 -1.442695, %v312_v40  ;;  %v210_v16 = vadd.f32 %v2045_v36, %v209_v13 }
 0x158   :  { %1666 = vpow2.f32 %v1258_v42 }
 0x160   :  { %v1665_v41 = vpop.eup %1664 }
 0x161   :  { %322 = vrot.lane.b32.xlu0 %v1665_v41, %s1886_s18 }
 0x162   :  { %v1667_v43 = vpop.eup %1666 }
 0x163   :  { %v316_v44 = vadd.f32 1.0, %v1667_v43 }
 0x165   :  { %1668 = vrcp.f32 %v316_v44 }
 0x16f   :  { %v1669_v45 = vpop.eup %1668 }
 0x170   :  { %v320_v48 = vmul.f32 0.0, %v1669_v45 }
 0x1d3   :  { %v323_v46 = vpop.permute.xlu0 %322 }
 0x1d4   :  { %v325_v47 = vmul.f32 %v1669_v45, %v323_v46 }
 0x1d6   :  { %327 = vrot.lane.b32.xlu0 %v325_v47, %s1886_s18 }
 0x248   :  { %v328_v49 = vpop.permute.xlu0 %327 }
 0x249   :  { %v330_v50 = vadd.f32 %v328_v49, %v320_v48 }
 0x24b   :  { %1670 = vtanh.f32 %v330_v50 }
 0x255   :  { %v1671_v51 = vpop.eup %1670 }
 0x256   :  { %333 = vrot.lane.b32.xlu1 %v1671_v51, %s1886_s18  ;;  %v124_v51 = vld [vmem:[#allocation2 + $0x28] sm:$0xff] }
 0x2c8   :  { %v334_v52 = vpop.permute.xlu1 %333 }
 0x2c9   :  { %v336_v53 = vmul.f32 %v1669_v45, %v334_v52 }
 0x2cb   :  { %338 = vrot.lane.b32.xlu1 %v336_v53, %s1887_s3 }
 0x33d   :  { %v339_v54 = vpop.permute.xlu1 %338 }
 0x33e   :  { %1427 = vmatmul.mubr.msk.f32.vlgmr.msra.gmra.mrb[2].mxu1 %vm238_vm1, %v339_v54 }
 0x33f   :  { %1587 = vmatpush3.bf16.msra.mxu1 %v2026_v15  ;;  %1437 = vmatprep.mubr.msk.f32.mxu1 %vm1884_vm0, %v1885_v1 }
 0x340   :  { %1588 = vmatprep.subr.bf16.mxu1 %v1883_v0 }
 0x343   :  { %1590 = vmatpush3.bf16.msra.mxu1 %v2029_v19 }
 0x344   :  { %1591 = vmatprep.subr.bf16.mxu1 %v1883_v0 }
 0x411   :  { %v408_v56 = vpop.f32.mrb[2].mxu1 }
 0x412   :  { %v412_v57 = vadd.f32 %v408_v56, %v205_v55  ;;  %v1428_v58 = vpop.f32.mrb[3].mxu1 }
 0x414   :  { %1672 = vtanh.f32 %v412_v57  ;;  %v1260_v60 = vmul.f32 -1.442695, %v412_v57 }
 0x416   :  { %1674 = vpow2.f32 %v1260_v60 }
 0x41e   :  { %v1673_v59 = vpop.eup %1672 }
 0x41f   :  { %422 = vrot.lane.b32.xlu0 %v1673_v59, %s1886_s18 }
 0x420   :  { %v1675_v61 = vpop.eup %1674 }
 0x421   :  { %v416_v62 = vadd.f32 1.0, %v1675_v61 }
 0x423   :  { %1676 = vrcp.f32 %v416_v62 }
 0x42d   :  { %v1677_v63 = vpop.eup %1676 }
 0x42e   :  { %v420_v4 = vmul.f32 %v1677_v63, %v330_v50  ;;  %v123_v50 = vld [vmem:[#allocation2 + $0x20] sm:$0xff] }
 0x42f   :  { %1401 = vmatprep.mubr.f32.mxu0 %v123_v50 }
 0x430   :  { %1402 = vmatmul.mubr.f32.gmra.mrb[4].mxu0 %v124_v51 }
 0x491   :  { %v423_v2 = vpop.permute.xlu0 %422 }
 0x492   :  { %v425_v3 = vmul.f32 %v1677_v63, %v423_v2 }
 0x494   :  { %427 = vrot.lane.b32.xlu1 %v425_v3, %s1886_s18 }
 0x503   :  { %v1403_v55 = vpop.f32.mrb[4].mxu0 }
 0x504   :  { %v219_v56 = vpop.f32.mrb[5].mxu0 }
 0x505   :  { %v220_v58 = vadd.f32 %v2045_v36, %v219_v56 }
 0x506   :  { %v428_v5 = vpop.permute.xlu1 %427 }
 0x507   :  { %v430_v6 = vadd.f32 %v428_v5, %v420_v4 }
 0x509   :  { %1678 = vtanh.f32 %v430_v6 }
 0x513   :  { %v1679_v9 = vpop.eup %1678 }
 0x514   :  { %433 = vrot.lane.b32.xlu0 %v1679_v9, %s1886_s18 }
 0x586   :  { %v434_v10 = vpop.permute.xlu0 %433 }
 0x587   :  { %v436_v11 = vmul.f32 %v1677_v63, %v434_v10 }
 0x589   :  { %438 = vrot.lane.b32.xlu1 %v436_v11, %s1887_s3 }
 0x5fb   :  { %v439_v14 = vpop.permute.xlu1 %438 }
 0x5fc   :  { %1438 = vmatmul.mubr.msk.f32.vlgmr.msra.gmra.mrb[4].mxu1 %vm238_vm1, %v439_v14  ;;  %v225_v14 = vadd.f32 %v1403_v55, %v2045_v36 }
 0x5fd   :  { %1593 = vmatpush3.bf16.msra.mxu1 %v2026_v15  ;;  %1448 = vmatprep.mubr.msk.f32.mxu1 %vm1884_vm0, %v1885_v1 }
 0x5fe   :  { %1594 = vmatprep.subr.bf16.mxu1 %v1883_v0 }
 0x601   :  { %1596 = vmatpush3.bf16.msra.mxu1 %v2029_v19 }
 0x602   :  { %1597 = vmatprep.subr.bf16.mxu1 %v1883_v0 }
 0x6cf   :  { %v508_v17 = vpop.f32.mrb[4].mxu1 }
 0x6d0   :  { %v512_v18 = vadd.f32 %v508_v17, %v210_v16  ;;  %v1439_v20 = vpop.f32.mrb[5].mxu1 }
 0x6d2   :  { %1680 = vtanh.f32 %v512_v18  ;;  %v1262_v22 = vmul.f32 -1.442695, %v512_v18 }
 0x6d4   :  { %1682 = vpow2.f32 %v1262_v22 }
 0x6dc   :  { %v1681_v21 = vpop.eup %1680 }
 0x6dd   :  { %522 = vrot.lane.b32.xlu0 %v1681_v21, %s1886_s18 }
 0x6de   :  { %v1683_v23 = vpop.eup %1682 }
 0x6df   :  { %v516_v24 = vadd.f32 1.0, %v1683_v23 }
 0x6e1   :  { %1684 = vrcp.f32 %v516_v24 }
 0x6eb   :  { %v1685_v25 = vpop.eup %1684 }
 0x6ec   :  { %v520_v28 = vmul.f32 %v1685_v25, %v430_v6 }
 0x74f   :  { %v523_v26 = vpop.permute.xlu0 %522 }
 0x750   :  { %v525_v27 = vmul.f32 %v1685_v25, %v523_v26 }
 0x752   :  { %527 = vrot.lane.b32.xlu1 %v525_v27, %s1886_s18 }
 0x7c4   :  { %v528_v29 = vpop.permute.xlu1 %527 }
 0x7c5   :  { %v530_v30 = vadd.f32 %v528_v29, %v520_v28 }
 0x7c7   :  { %1686 = vtanh.f32 %v530_v30 }
 0x7d1   :  { %v1687_v31 = vpop.eup %1686 }
 0x7d2   :  { %533 = vrot.lane.b32.xlu0 %v1687_v31, %s1886_s18  ;;  %v126_v31 = vld [vmem:[#allocation2 + $0x38] sm:$0xff] }
 0x844   :  { %v534_v32 = vpop.permute.xlu0 %533 }
 0x845   :  { %v536_v33 = vmul.f32 %v1685_v25, %v534_v32 }
 0x847   :  { %538 = vrot.lane.b32.xlu1 %v536_v33, %s1887_s3 }
 0x8b9   :  { %v539_v34 = vpop.permute.xlu1 %538 }
 0x8ba   :  { %1449 = vmatmul.mubr.msk.f32.vlgmr.msra.gmra.mrb[6].mxu1 %vm238_vm1, %v539_v34 }
 0x8bb   :  { %1599 = vmatpush3.bf16.msra.mxu1 %v2026_v15  ;;  %1459 = vmatprep.mubr.msk.f32.mxu1 %vm1884_vm0, %v1885_v1 }
 0x8bc   :  { %1600 = vmatprep.subr.bf16.mxu1 %v1883_v0 }
 0x8bf   :  { %1602 = vmatpush3.bf16.msra.mxu1 %v2029_v19 }
 0x8c0   :  { %1603 = vmatprep.subr.bf16.mxu1 %v1883_v0 }
 0x98d   :  { %v608_v37 = vpop.f32.mrb[6].mxu1 }
 0x98e   :  { %v612_v38 = vadd.f32 %v608_v37, %v215_v35  ;;  %v1450_v39 = vpop.f32.mrb[7].mxu1 }
 0x990   :  { %1688 = vtanh.f32 %v612_v38  ;;  %v1264_v41 = vmul.f32 -1.442695, %v612_v38 }
 0x992   :  { %1690 = vpow2.f32 %v1264_v41 }
 0x99a   :  { %v1689_v40 = vpop.eup %1688 }
 0x99b   :  { %622 = vrot.lane.b32.xlu0 %v1689_v40, %s1886_s18 }
 0x99c   :  { %v1691_v42 = vpop.eup %1690 }
 0x99d   :  { %v616_v43 = vadd.f32 1.0, %v1691_v42 }
 0x99f   :  { %1692 = vrcp.f32 %v616_v43 }
 0x9a9   :  { %v1693_v44 = vpop.eup %1692 }
 0x9aa   :  { %v620_v47 = vmul.f32 %v1693_v44, %v530_v30  ;;  %v125_v30 = vld [vmem:[#allocation2 + $0x30] sm:$0xff] }
 0x9ab   :  { %1404 = vmatprep.mubr.f32.mxu0 %v125_v30  ;;  %v1138_v30 = vld [vmem:[#allocation10 + $0x48] sm:$0xff] }
 0x9ac   :  { %1405 = vmatmul.mubr.f32.gmra.mrb[6].mxu0 %v126_v31 }
 0x9ad   :  { %1538 = vmatprep.mubr.msk.f32.mxu0 %vm1884_vm0, %v1885_v1 }
 0xa0d   :  { %v623_v45 = vpop.permute.xlu0 %622 }
 0xa0e   :  { %v625_v46 = vmul.f32 %v1693_v44, %v623_v45 }
 0xa10   :  { %627 = vrot.lane.b32.xlu1 %v625_v46, %s1886_s18 }
 0xa7f   :  { %v1406_v35 = vpop.f32.mrb[6].mxu0 }
 0xa80   :  { %v229_v37 = vpop.f32.mrb[7].mxu0  ;;  %v235_v55 = vadd.f32 %v1406_v35, %v2045_v36  ;;  %v1141_v35 = vld [vmem:[#allocation10 + $0x60] sm:$0xff] }
 0xa81   :  { %v230_v39 = vadd.f32 %v2045_v36, %v229_v37  ;;  %v1142_v37 = vld [vmem:[#allocation10 + $0x68] sm:$0xff] }
 0xa82   :  { %v628_v48 = vpop.permute.xlu1 %627 }
 0xa83   :  { %v630_v49 = vadd.f32 %v628_v48, %v620_v47 }
 0xa85   :  { %1694 = vtanh.f32 %v630_v49 }
 0xa8f   :  { %v1695_v52 = vpop.eup %1694 }
 0xa90   :  { %633 = vrot.lane.b32.xlu0 %v1695_v52, %s1886_s18 }
 0xb02   :  { %v634_v53 = vpop.permute.xlu0 %633 }
 0xb03   :  { %v636_v54 = vmul.f32 %v1693_v44, %v634_v53 }
 0xb05   :  { %638 = vrot.lane.b32.xlu1 %v636_v54, %s1887_s3 }
 0xb77   :  { %v639_v57 = vpop.permute.xlu1 %638 }
 0xb78   :  { %1460 = vmatmul.mubr.msk.f32.vlgmr.msra.gmra.mrb[8].mxu1 %vm238_vm1, %v639_v57 }
 0xb79   :  { %1605 = vmatpush3.bf16.msra.mxu1 %v2026_v15  ;;  %1470 = vmatprep.mubr.msk.f32.mxu1 %vm1884_vm0, %v1885_v1 }
 0xb7a   :  { %1606 = vmatprep.subr.bf16.mxu1 %v1883_v0 }
 0xb7d   :  { %1608 = vmatpush3.bf16.msra.mxu1 %v2029_v19 }
 0xb7e   :  { %1609 = vmatprep.subr.bf16.mxu1 %v1883_v0 }
 0xc4b   :  { %v708_v59 = vpop.f32.mrb[8].mxu1 }
 0xc4c   :  { %v712_v60 = vadd.f32 %v708_v59, %v220_v58  ;;  %v1461_v61 = vpop.f32.mrb[9].mxu1 }
 0xc4e   :  { %1696 = vtanh.f32 %v712_v60  ;;  %v1266_v63 = vmul.f32 -1.442695, %v712_v60 }
 0xc50   :  { %1698 = vpow2.f32 %v1266_v63 }
 0xc58   :  { %v1697_v62 = vpop.eup %1696 }
 0xc59   :  { %722 = vrot.lane.b32.xlu0 %v1697_v62, %s1886_s18 }
 0xc5a   :  { %v1699_v2 = vpop.eup %1698 }
 0xc5b   :  { %v716_v3 = vadd.f32 1.0, %v1699_v2 }
 0xc5d   :  { %1700 = vrcp.f32 %v716_v3 }
 0xc67   :  { %v1701_v4 = vpop.eup %1700 }
 0xc68   :  { %v720_v7 = vmul.f32 %v1701_v4, %v630_v49 }
 0xccb   :  { %v723_v5 = vpop.permute.xlu0 %722 }
 0xccc   :  { %v725_v6 = vmul.f32 %v1701_v4, %v723_v5  ;;  %v1037_v5 = vld [vmem:[#allocation8] sm:$0xff] }
 0xcce   :  { %727 = vrot.lane.b32.xlu1 %v725_v6, %s1886_s18  ;;  %v1038_v6 = vld [vmem:[#allocation8 + $0x8] sm:$0xff] }
 0xd40   :  { %v728_v8 = vpop.permute.xlu1 %727 }
 0xd41   :  { %v730_v9 = vadd.f32 %v728_v8, %v720_v7  ;;  %v1039_v7 = vld [vmem:[#allocation8 + $0x10] sm:$0xff]  ;;  %v1622_v8 = vpack.c.bf16 %v1038_v6, %v1037_v5 }
 0xd43   :  { %1702 = vtanh.f32 %v730_v9 }
 0xd4d   :  { %v1703_v10 = vpop.eup %1702 }
 0xd4e   :  { %733 = vrot.lane.b32.xlu0 %v1703_v10, %s1886_s18 }
 0xdc0   :  { %v734_v11 = vpop.permute.xlu0 %733 }
 0xdc1   :  { %v736_v12 = vmul.f32 %v1701_v4, %v734_v11 }
 0xdc3   :  { %738 = vrot.lane.b32.xlu1 %v736_v12, %s1887_s3  ;;  %v1129_v12 = vld [vmem:[#allocation10] sm:$0xff] }
 0xe35   :  { %v739_v13 = vpop.permute.xlu1 %738 }
 0xe36   :  { %1471 = vmatmul.mubr.msk.f32.vlgmr.msra.gmra.mrb[10].mxu1 %vm238_vm1, %v739_v13  ;;  %v1130_v13 = vld [vmem:[#allocation10 + $0x8] sm:$0xff] }
 0xe37   :  { %1611 = vmatpush3.bf16.msra.mxu1 %v2026_v15  ;;  %1481 = vmatprep.mubr.msk.f32.mxu1 %vm1884_vm0, %v1885_v1 }
 0xe38   :  { %1612 = vmatprep.subr.bf16.mxu1 %v1883_v0 }
 0xe3b   :  { %1614 = vmatpush3.bf16.msra.mxu1 %v2029_v19 }
 0xe3c   :  { %1615 = vmatprep.subr.bf16.mxu1 %v1883_v0 }
 0xf09   :  { %v808_v16 = vpop.f32.mrb[10].mxu1 }
 0xf0a   :  { %v812_v17 = vadd.f32 %v808_v16, %v225_v14  ;;  %v1472_v18 = vpop.f32.mrb[11].mxu1  ;;  %v1628_v14 = vpack.c.bf16 %v1130_v13, %v1129_v12 }
 0xf0c   :  { %1704 = vtanh.f32 %v812_v17  ;;  %v1268_v21 = vmul.f32 -1.442695, %v812_v17  ;;  %1629 = vmatpush3.bf16.msra.mxu0 %v1628_v14 }
 0xf0d   :  { %1630 = vmatprep.subr.bf16.mxu0 %v1883_v0 }
 0xf0e   :  { %1706 = vpow2.f32 %v1268_v21  ;;  %v1132_v21 = vld [vmem:[#allocation10 + $0x18] sm:$0xff] }
 0xf16   :  { %v1705_v20 = vpop.eup %1704 }
 0xf17   :  { %822 = vrot.lane.b32.xlu0 %v1705_v20, %s1886_s18  ;;  %v1131_v20 = vld [vmem:[#allocation10 + $0x10] sm:$0xff] }
 0xf18   :  { %v1707_v22 = vpop.eup %1706 }
 0xf19   :  { %v816_v23 = vadd.f32 1.0, %v1707_v22  ;;  %v1631_v22 = vpack.c.bf16 %v1132_v21, %v1131_v20 }
 0xf1b   :  { %1708 = vrcp.f32 %v816_v23  ;;  %1632 = vmatpush3.bf16.msra.mxu0 %v1631_v22  ;;  %v1133_v23 = vld [vmem:[#allocation10 + $0x20] sm:$0xff] }
 0xf1c   :  { %1633 = vmatprep.subr.bf16.mxu0 %v1883_v0 }
 0xf25   :  { %v1709_v24 = vpop.eup %1708 }
 0xf26   :  { %v820_v27 = vmul.f32 %v1709_v24, %v730_v9  ;;  %v1040_v9 = vld [vmem:[#allocation8 + $0x18] sm:$0xff] }
 0xf27   :  { %v1625_v10 = vpack.c.bf16 %v1040_v9, %v1039_v7 }
 0xf89   :  { %v823_v25 = vpop.permute.xlu0 %822 }
 0xf8a   :  { %v825_v26 = vmul.f32 %v1709_v24, %v823_v25 }
 0xf8c   :  { %827 = vrot.lane.b32.xlu1 %v825_v26, %s1886_s18  ;;  %v1135_v26 = vld [vmem:[#allocation10 + $0x30] sm:$0xff] }
 0xffe   :  { %v828_v28 = vpop.permute.xlu1 %827 }
 0xfff   :  { %v830_v29 = vadd.f32 %v828_v28, %v820_v27  ;;  %v1136_v27 = vld [vmem:[#allocation10 + $0x38] sm:$0xff] }
0x1000   :  { %v1637_v28 = vpack.c.bf16 %v1136_v27, %v1135_v26 }
0x1001   :  { %1710 = vtanh.f32 %v830_v29 }
0x100b   :  { %v1711_v32 = vpop.eup %1710 }
0x100c   :  { %833 = vrot.lane.b32.xlu0 %v1711_v32, %s1886_s18  ;;  %v1139_v32 = vld [vmem:[#allocation10 + $0x50] sm:$0xff] }
0x107e   :  { %v834_v33 = vpop.permute.xlu0 %833 }
0x107f   :  { %v836_v34 = vmul.f32 %v1709_v24, %v834_v33  ;;  %v1134_v24 = vld [vmem:[#allocation10 + $0x28] sm:$0xff]  ;;  %v1140_v33 = vld [vmem:[#allocation10 + $0x58] sm:$0xff] }
0x1080   :  { %v1634_v25 = vpack.c.bf16 %v1134_v24, %v1133_v23 }
0x1081   :  { %838 = vrot.lane.b32.xlu1 %v836_v34, %s1887_s3  ;;  %v1643_v34 = vpack.c.bf16 %v1140_v33, %v1139_v32 }
0x1082   :  { %1635 = vmatpush3.bf16.msra.mxu0 %v1634_v25 }
0x1083   :  { %1636 = vmatprep.subr.bf16.mxu0 %v1883_v0 }
0x1086   :  { %1638 = vmatpush3.bf16.msra.mxu0 %v1637_v28 }
0x1087   :  { %1639 = vmatprep.subr.bf16.mxu0 %v1883_v0 }
0x10f3   :  { %v839_v38 = vpop.permute.xlu1 %838 }
0x10f4   :  { %1482 = vmatmul.mubr.msk.f32.vlgmr.msra.gmra.mrb[12].mxu1 %vm238_vm1, %v839_v38  ;;  %v1646_v38 = vpack.c.bf16 %v1142_v37, %v1141_v35 }
0x10f5   :  { %1617 = vmatpush3.bf16.msra.mxu1 %v2026_v15  ;;  %1492 = vmatprep.mubr.msk.f32.mxu1 %vm1884_vm0, %v1885_v1 }
0x10f6   :  { %1618 = vmatprep.subr.bf16.mxu1 %v1883_v0 }
0x10f9   :  { %1620 = vmatpush3.bf16.msra.mxu1 %v2029_v19 }
0x10fa   :  { %1621 = vmatprep.subr.bf16.mxu1 %v1883_v0 }
0x11c7   :  { %v908_v40 = vpop.f32.mrb[12].mxu1 }
0x11c8   :  { %v912_v41 = vadd.f32 %v908_v40, %v230_v39  ;;  %v1483_v42 = vpop.f32.mrb[13].mxu1  ;;  %v1143_v39 = vld [vmem:[#allocation10 + $0x70] sm:$0xff]  ;;  %v1144_v40 = vld [vmem:[#allocation10 + $0x78] sm:$0xff] }
0x11c9   :  { %v1273_v42 = vld [vmem:[%s2169_s5] ss:$0 sm:$0xff]  ;;  %s1888_s5 = smov [#allocation11]  }
0x11ca   :  { %1712 = vtanh.f32 %v912_v41  ;;  %v1270_v44 = vmul.f32 -1.442695, %v912_v41  ;;  %v1649_v41 = vpack.c.bf16 %v1144_v40, %v1143_v39 }
0x11cc   :  { %1714 = vpow2.f32 %v1270_v44 }
0x11d4   :  { %v1713_v43 = vpop.eup %1712 }
0x11d5   :  { %922 = vrot.lane.b32.xlu0 %v1713_v43, %s1886_s18 }
0x11d6   :  { %v1715_v15 = vpop.eup %1714 }
0x11d7   :  { %v916_v45 = vadd.f32 1.0, %v1715_v15 }
0x11d9   :  { %1716 = vrcp.f32 %v916_v45 }
0x11e3   :  { %v1717_v46 = vpop.eup %1716 }
0x11e4   :  { %v920_v19 = vmul.f32 %v1717_v46, %v830_v29  ;;  %v1137_v29 = vld [vmem:[#allocation10 + $0x40] sm:$0xff] }
0x11e5   :  { %v1640_v31 = vpack.c.bf16 %v1138_v30, %v1137_v29 }
0x11e7   :  { %1641 = vmatpush3.bf16.msra.mxu0 %v1640_v31 }
0x11e8   :  { %1642 = vmatprep.subr.bf16.mxu0 %v1883_v0 }
0x11eb   :  { %1644 = vmatpush3.bf16.msra.mxu0 %v1643_v34 }
0x11ec   :  { %1645 = vmatprep.subr.bf16.mxu0 %v1883_v0 }
0x11ef   :  { %1647 = vmatpush3.bf16.msra.mxu0 %v1646_v38 }
0x11f0   :  { %1648 = vmatprep.subr.bf16.mxu0 %v1883_v0 }
0x11f3   :  { %1650 = vmatpush3.bf16.msra.mxu0 %v1649_v41 }
0x1247   :  { %v923_v47 = vpop.permute.xlu0 %922 }
0x1248   :  { %v925_v48 = vmul.f32 %v1717_v46, %v923_v47 }
0x124a   :  { %927 = vrot.lane.b32.xlu1 %v925_v48, %s1886_s18 }
0x12bc   :  { %v928_v49 = vpop.permute.xlu1 %927 }
0x12bd   :  { %v930_v50 = vadd.f32 %v928_v49, %v920_v19  ;;  %v1222_v19 = vlaneseq }
0x12bf   :  { %1718 = vtanh.f32 %v930_v50  ;;  %v1223_v49 = vand.u32 127, %v1222_v19 }
0x12c1   :  { %vm1224_vm2 = vcmp.lt.s32.totalorder %v1223_v49, 4 }
0x12c9   :  { %v1719_v51 = vpop.eup %1718 }
0x12ca   :  { %933 = vrot.lane.b32.xlu0 %v1719_v51, %s1886_s18 }
0x133c   :  { %v934_v52 = vpop.permute.xlu0 %933 }
0x133d   :  { %v936_v53 = vmul.f32 %v1717_v46, %v934_v52 }
0x133f   :  { %938 = vrot.lane.b32.xlu1 %v936_v53, %s1887_s3 }
0x13b1   :  { %v939_v54 = vpop.permute.xlu1 %938 }
0x13b2   :  { %1493 = vmatmul.mubr.msk.f32.vlgmr.msra.gmra.mrb[14].mxu1 %vm238_vm1, %v939_v54 }
0x13b3   :  { %1503 = vmatprep.mubr.msk.f32.mxu1 %vm1884_vm0, %v1885_v1  ;;  %1623 = vmatpush3.bf16.msra.mxu1 %v1622_v8 }
0x13b4   :  { %1624 = vmatprep.subr.bf16.mxu1 %v1883_v0  ;;  %v1276_v0 = vld [vmem:[%s2171_s7] ss:$0 sm:$0xff]  ;;  %s1246_s7 = sshll.u32 %s1888_s5, 4  ;;  %s1247_s7 = int_to_ptr.vmem [resolvable:$true] %s1246_s7 }
0x13b5   :  { %s1846_s25 = scalar_lea.vmem %s1247_s7, 128  ;;  %p1851_p13 = scmp.lt.s32.totalorder %s1247_s7, %s1247_s7 }
0x13b6   :  { %p1847_p12 = scmp.ne.s32.totalorder %s1247_s7, %s1846_s25  ;;  %p1852_p0 = scmp.lt.s32.totalorder %s1846_s25, %s1846_s25 }
0x13b7   :  { %1626 = vmatpush3.bf16.msra.mxu1 %v1625_v10 }
0x13b8   :  { %p1853_p1 = por %p1852_p0, %p1851_p13 }
0x13ba   :  { %p1854_p2 = pnand %p1853_p1, %p1847_p12 }
0x1485   :  { %v1008_v56 = vpop.f32.mrb[14].mxu1 }
0x1486   :  { %v1012_v57 = vadd.f32 %v1008_v56, %v235_v55  ;;  %v1494_v58 = vpop.f32.mrb[15].mxu1 }
0x1488   :  { %1720 = vtanh.f32 %v1012_v57  ;;  %v1272_v60 = vmul.f32 -1.442695, %v1012_v57 }
0x148a   :  { %1722 = vpow2.f32 %v1272_v60 }
0x1492   :  { %v1721_v59 = vpop.eup %1720 }
0x1493   :  { %1022 = vrot.lane.b32.xlu0 %v1721_v59, %s1886_s18 }
0x1494   :  { %v1723_v61 = vpop.eup %1722 }
0x1495   :  { %v1016_v62 = vadd.f32 1.0, %v1723_v61 }
0x1497   :  { %1724 = vrcp.f32 %v1016_v62 }
0x14a1   :  { %v1725_v63 = vpop.eup %1724 }
0x14a2   :  { %v1020_v1 = vmul.f32 %v1725_v63, %v930_v50 }
0x1505   :  { %v1023_v2 = vpop.permute.xlu0 %1022 }
0x1506   :  { %v1025_v3 = vmul.f32 %v1725_v63, %v1023_v2 }
0x1508   :  { %1027 = vrot.lane.b32.xlu1 %v1025_v3, %s1886_s18 }
0x157a   :  { %v1028_v4 = vpop.permute.xlu1 %1027 }
0x157b   :  { %v1030_v36 = vadd.f32 %v1028_v4, %v1020_v1 }
0x157d   :  { %1726 = vtanh.f32 %v1030_v36 }
0x1587   :  { %v1727_v11 = vpop.eup %1726 }
0x1588   :  { %1033 = vrot.lane.b32.xlu0 %v1727_v11, %s1886_s18 }
0x15fa   :  { %v1034_v16 = vpop.permute.xlu0 %1033 }
0x15fb   :  { %v1036_v17 = vmul.f32 %v1725_v63, %v1034_v16 }
0x15fd   :  { %1049 = vrot.lane.b32.xlu1 %v1036_v17, %s1887_s3 }
0x166f   :  { %v1050_v18 = vpop.permute.xlu1 %1049 }
0x1670   :  { %1504 = vmatmul.mubr.msk.f32.vlgmr.msra.gmra.mrb[16].mxu1 %vm238_vm1, %v1050_v18 }
0x1743   :  { %v1119_v43 = vpop.f32.mrb[16].mxu1 }
0x1744   :  { %v1120_v44 = vadd.f32 %v1273_v42, %v1119_v43  ;;  %v1505_v15 = vpop.f32.mrb[17].mxu1 }
0x1746   :  { %v1275_v45 = vmul.f32 -1.442695, %v1120_v44 }
0x1748   :  { %1728 = vpow2.f32 %v1275_v45 }
0x1752   :  { %v1729_v46 = vpop.eup %1728 }
0x1753   :  { %v1126_v47 = vadd.f32 1.0, %v1729_v46 }
0x1755   :  { %1730 = vrcp.f32 %v1126_v47 }
0x175f   :  { %v1731_v48 = vpop.eup %1730 }
0x1760   :  { %1539 = vmatmul.mubr.f32.vlgmr.msra.gmra.mrb[8].mxu0 %v1731_v48 }
0x1833   :  { %v1218_v50 = vpop.f32.mrb[8].mxu0 }
0x1834   :  { %v1219_v51 = vadd.f32 %v1276_v0, %v1218_v50  ;;  %v1540_v52 = vpop.f32.mrb[9].mxu0 }
0x1836   :  { %v1225_v53 = vsel %vm1224_vm2, %v1219_v51, -1e+30 }
0x1837   :  { %1226 = vmax.xlane.f32.xlu0 %v1225_v53 }
0x18c4   :  { %v1227_v54 = vpop.xlane.xlu0 %1226 }
0x18c5   :  { %v1228_v55 = vsub.f32 %v1225_v53, %v1227_v54 }
0x18c7   :  { %v1229_v56 = vmul.f32 1.442695, %v1228_v55 }
0x18c9   :  { %1732 = vpow2.f32 %v1229_v56 }
0x18d3   :  { %v1733_v57 = vpop.eup %1732 }
0x18d4   :  { %v1231_v58 = vsel %vm1224_vm2, %v1733_v57, 0.0 }
0x18d5   :  { %1232 = vadd.xlane.f32.xlu1 %v1231_v58 }
0x1962   :  { %v1233_v59 = vpop.xlane.xlu1 %1232 }
0x1963   :  { %1734 = vlog2.f32 %v1233_v59 }
0x196d   :  { %v1735_v60 = vpop.eup %1734 }
0x196e   :  { %v1235_v61 = vmul.f32 0.6931472, %v1735_v60 }
0x1970   :  { %v1236_v62 = vadd.f32 %v1235_v61, %v1227_v54 }
0x1972   :  { %v1237_v63 = vsub.f32 %v1219_v51, %v1236_v62 }
0x1974   :  { %v1238_v2 = vsel %vm1224_vm2, %v1237_v63, %v1219_v51 }
0x1975   :  { %1239 = vst [vmem:[#allocation11] sm:$0xff] %v1238_v2 }
0x1976   :  { %1857 = shalt.err (!%p1854_p2)
}
0x1977   :  { %s1858_s29 = scalar_lea.hbm %s2172_s8, 128 }
0x1978   :  { %p1859_p3 = scmp.ne.s32.totalorder %s2172_s8, %s1858_s29  ;;  %p1862_p4 = scmp.lt.u32.totalorder %s1858_s29, %s2172_s8 }
0x197a   :  { %p1864_p5 = pnand %p1862_p4, %p1859_p3 }
0x197c   :  { %1867 = shalt.err (!%p1864_p5)
}
0x197d   :  { %1249 = dma.vmem_to_hbm [thread:$0]  %s1247_s7, 128, %s2172_s8, [#allocation4]  }
0x197e   :  { %1874 = dma.done.wait [#allocation4], 128  }
0x197f   :  { %1875 = vsyncadd [#allocation4], 4294967168 }
0x1980   :  { %1253 = vsyncpa [#allocation3], 1 }
0x1981   :  { %1254 = vsyncpa [#allocation6], 1 }
0x1982   :  { %1255 = vsyncpa [#allocation9], 1 }
0x1983   :  { %1256 = vsyncpa [#allocation4], 1 }

</bundles_post_ra>
